<compile_context>
chip_gen: v7x
topology: tpu7x:2x2x1
jax: 0.10.0
libtpu: 0.0.40
codegen_flags: <defaults>
</compile_context>

<pallas_src>
import functools

import jax
import jax.numpy as jnp
from jax.experimental import pallas as pl
from jax.experimental.pallas import tpu as pltpu

HIDDEN = 64
TB_LARGE = 256   # batch tile for large batches (fills MXU N on v6e/v7x)
TB_SMALL = 128   # minimum lane-aligned tile


def _pick_batch_tile(b):
    # Prefer 256-wide tiles, but only once the batch is big enough to still
    # give v7x's second TensorCore a tile of its own.
    return TB_LARGE if b >= 2 * TB_LARGE else TB_SMALL


# ---------------------------------------------------------------------------
# Pallas kernel: fused (Linear -> Tanh) x3 -> Linear on one batch tile.
#   x_ref  : (D, TB)  bf16   activations, batch along the 128-wide lane axis
#   wK     : (out, in) bf16  torch Linear layout, VMEM-resident
#   bK     : (out, 1)  f32   broadcast over lanes
#   w4t    : (64, 1)   f32   final layer weight, transposed for VPU/XLU path
#   b4     : (1, 1)    f32
#   o_ref  : (1, TB)   f32   lane-dense output slab
# ---------------------------------------------------------------------------
def mlp_kernel(x_ref,
               w1_ref, b1_ref,
               w2_ref, b2_ref,
               w3_ref, b3_ref,
               w4t_ref, b4_ref,
               o_ref):
    h = jnp.tanh(jnp.dot(w1_ref[...], x_ref[...],
                         preferred_element_type=jnp.float32) + b1_ref[...])
    h = jnp.tanh(jnp.dot(w2_ref[...], h.astype(jnp.bfloat16),
                         preferred_element_type=jnp.float32) + b2_ref[...])
    h = jnp.tanh(jnp.dot(w3_ref[...], h.astype(jnp.bfloat16),
                         preferred_element_type=jnp.float32) + b3_ref[...])
    # Final layer has M = 1: skip the MXU, use a VPU broadcast-multiply and a
    # sublane (XLU) reduce instead -> no MXU pop bubble at the tile epilogue.
    o_ref[...] = jnp.sum(w4t_ref[...] * h, axis=0, keepdims=True) + b4_ref[...]


def _resident_spec(arr):
    # Whole array, same block index at every grid step -> DMA'd into VMEM once
    # and reused across all batch tiles (Pallas skips the re-copy).
    return pl.BlockSpec(arr.shape, lambda i: (0, 0))


def mlp_forward(x_t, params, tb):
    """x_t: (D, Bp) bf16 with Bp % tb == 0.  Returns (1, Bp) f32."""
    (w1, b1), (w2, b2), (w3, b3), (w4t, b4) = params
    d_in, bp = x_t.shape
    return pl.pallas_call(
        mlp_kernel,
        out_shape=jax.ShapeDtypeStruct((1, bp), jnp.float32),
        grid=(bp // tb,),
        in_specs=[
            pl.BlockSpec((d_in, tb), lambda i: (0, i)),    # batch tile of inputs
            _resident_spec(w1), _resident_spec(b1),
            _resident_spec(w2), _resident_spec(b2),
            _resident_spec(w3), _resident_spec(b3),
            _resident_spec(w4t), _resident_spec(b4),
        ],
        out_specs=pl.BlockSpec((1, tb), lambda i: (0, i)),  # lane-dense output
        compiler_params=pltpu.CompilerParams(
            # Batch tiles are independent: lets megacore (v7x) shard them
            # across the two TensorCores; harmless on single-TC v5e/v6e.
            # Total VMEM footprint is ~0.1 MB, so no vmem_limit_bytes needed.
            dimension_semantics=("parallel",)),
    )(x_t, w1, b1, w2, b2, w3, b3, w4t, b4)


# ---------------------------------------------------------------------------
# Parameter construction (mirrors the torch __init__):
#   xavier_normal_ weights, constant 0.001 biases.
#   Layers 1-3: bf16 weights in torch (out, in) layout for the MXU path.
#   Layer 4:    f32 weight stored transposed (in, 1) for the VPU/XLU path.
# ---------------------------------------------------------------------------
def init_params(key, state_size, n_action):
    d_in = state_size + n_action - 1
    dims = [(d_in, HIDDEN), (HIDDEN, HIDDEN), (HIDDEN, HIDDEN), (HIDDEN, 1)]
    keys = jax.random.split(key, len(dims))
    params = []
    for idx, (k, (fi, fo)) in enumerate(zip(keys, dims)):
        std = (2.0 / (fi + fo)) ** 0.5
        w = std * jax.random.normal(k, (fo, fi), dtype=jnp.float32)   # (out, in)
        b = jnp.full((fo, 1), 0.001, dtype=jnp.float32)
        if idx < 3:
            params.append((w.astype(jnp.bfloat16), b))
        else:
            params.append((w.T, b))                  # (in, 1) f32 for last layer
    return params


# ---------------------------------------------------------------------------
# Batched forward: (B, *state_shape) states + (B,) int actions -> (B, 1) f32
# ---------------------------------------------------------------------------
@functools.partial(jax.jit, static_argnames=("n_action",))
def batched_forward(states, actions, params, n_action):
    b = states.shape[0]
    tb = _pick_batch_tile(b)
    bp = ((b + tb - 1) // tb) * tb

    # Build the kernel input directly in transposed (D, Bp) bf16 layout:
    #   * states: flatten + a single transpose, cast to bf16 (halves input DMA)
    #   * one-hot: built as (A, B) via a lane compare (no transpose); it is
    #     all-zeros for action >= n_action - 1 (the "no-op" action), matching
    #     the original `if action < 6` branch.
    s_t = states.reshape(b, -1).astype(jnp.bfloat16).T              # (S, B)
    acts = jnp.arange(n_action - 1, dtype=actions.dtype)[:, None]   # (A, 1)
    a_t = (acts == actions[None, :]).astype(jnp.bfloat16)           # (A, B)
    x_t = jnp.concatenate([s_t, a_t], axis=0)                       # (D, B)
    x_t = jnp.pad(x_t, ((0, 0), (0, bp - b)))                       # (D, Bp)
    # TODO(synk): deeper fusion (feed raw states + int actions and fold the
    # one-hot into layer 1 as in-kernel selects) would also remove the concat.

    out = mlp_forward(x_t, params, tb)                              # (1, Bp)
    return out[0, :b, None]                                         # (B, 1)


# Single-sample forward matching the PyTorch module's signature/semantics.
def state_action_value_forward(state, action, params, n_action):
    out = batched_forward(state[None, ...],
                          jnp.asarray([action], dtype=jnp.int32),
                          params, n_action)
    return out[0]                                                   # shape (1,)


# ---------------------------------------------------------------------------
# Pure-JAX reference matching the kernel's bf16-input / f32-accumulate math.
# ---------------------------------------------------------------------------
def reference_forward(states, actions, params, n_action):
    (w1, b1), (w2, b2), (w3, b3), (w4t, b4) = params
    f32 = jnp.float32
    hi = jax.lax.Precision.HIGHEST
    b = states.shape[0]
    s = states.reshape(b, -1).astype(jnp.bfloat16).astype(f32)
    a = jax.nn.one_hot(actions, n_action - 1, dtype=f32)
    x = jnp.concatenate([s, a], axis=1)                             # (B, D)

    def layer(h, w, bias):
        return jnp.tanh(jnp.dot(h, w.astype(f32).T, precision=hi) + bias[:, 0])

    h = layer(x, w1, b1)
    h = layer(h.astype(jnp.bfloat16).astype(f32), w2, b2)
    h = layer(h.astype(jnp.bfloat16).astype(f32), w3, b3)
    return jnp.dot(h, w4t, precision=hi) + b4[0]                    # (B, 1)


if __name__ == "__main__":
    state_size = 16
    n_action = 7                     # one-hot length 6 -> input dim D = 22

    key = jax.random.PRNGKey(0)
    k_params, k_state, k_batch, k_act = jax.random.split(key, 4)

    params = init_params(k_params, state_size, n_action)

    # --- single (state, action) pair, as in the torch forward ---------------
    state = jax.random.normal(k_state, (4, 4), dtype=jnp.float32)   # flattens to 16
    action = 2
    q = state_action_value_forward(state, action, params, n_action)
    q = jax.block_until_ready(q)
    assert q.shape == (1,) and q.dtype == jnp.float32
    assert bool(jnp.all(jnp.isfinite(q)))

    # --- batched path: 512 pairs -> TB=256, 2 grid tiles (megacore-friendly) -
    B = 512
    states = jax.random.normal(k_batch, (B, 4, 4), dtype=jnp.float32)
    actions = jax.random.randint(k_act, (B,), 0, n_action, dtype=jnp.int32)
    qs = batched_forward(states, actions, params, n_action)
    qs = jax.block_until_ready(qs)
    assert qs.shape == (B, 1) and qs.dtype == jnp.float32

    ref = reference_forward(states, actions, params, n_action)
    assert bool(jnp.allclose(qs, ref, atol=5e-3, rtol=5e-3)), (
        "max abs err = %f" % float(jnp.max(jnp.abs(qs - ref))))

    print("KERNEL_OK")
</pallas_src>

<mosaic_0001>
module attributes {stable_mosaic.version = 11 : i64} {
  func.func @mlp_kernel(%arg0: i32, %arg1: memref<22x128xbf16, #tpu.memory_space<vmem>>, %arg2: memref<64x22xbf16, #tpu.memory_space<vmem>>, %arg3: memref<64x1xf32, #tpu.memory_space<vmem>>, %arg4: memref<64x64xbf16, #tpu.memory_space<vmem>>, %arg5: memref<64x1xf32, #tpu.memory_space<vmem>>, %arg6: memref<64x64xbf16, #tpu.memory_space<vmem>>, %arg7: memref<64x1xf32, #tpu.memory_space<vmem>>, %arg8: memref<64x1xf32, #tpu.memory_space<vmem>>, %arg9: memref<1x1xf32, #tpu.memory_space<vmem>>, %arg10: memref<1x128xf32, #tpu.memory_space<vmem>>) attributes {dimension_semantics = [#tpu.dimension_semantics<parallel>], iteration_bounds = array<i64: 1>, scalar_prefetch = 0 : i64, scratch_operands = 0 : i64, tpu.core_type = #tpu.core_type<tc>, window_params = [{transform_indices = @transform_0, window_bounds = array<i64: 22, 128>}, {pipeline_mode = #tpu.pipeline_mode<synchronous>, transform_indices = @transform_1, window_bounds = array<i64: 64, 22>}, {pipeline_mode = #tpu.pipeline_mode<synchronous>, transform_indices = @transform_2, window_bounds = array<i64: 64, 1>}, {pipeline_mode = #tpu.pipeline_mode<synchronous>, transform_indices = @transform_3, window_bounds = array<i64: 64, 64>}, {pipeline_mode = #tpu.pipeline_mode<synchronous>, transform_indices = @transform_4, window_bounds = array<i64: 64, 1>}, {pipeline_mode = #tpu.pipeline_mode<synchronous>, transform_indices = @transform_5, window_bounds = array<i64: 64, 64>}, {pipeline_mode = #tpu.pipeline_mode<synchronous>, transform_indices = @transform_6, window_bounds = array<i64: 64, 1>}, {pipeline_mode = #tpu.pipeline_mode<synchronous>, transform_indices = @transform_7, window_bounds = array<i64: 64, 1>}, {pipeline_mode = #tpu.pipeline_mode<synchronous>, transform_indices = @transform_8, window_bounds = array<i64: 1, 1>}, {transform_indices = @transform_9, window_bounds = array<i64: 1, 128>}]} {
    %c0 = arith.constant 0 : index
    %c0_0 = arith.constant 0 : index
    %0 = vector.load %arg2[%c0, %c0_0] : memref<64x22xbf16, #tpu.memory_space<vmem>>, vector<64x22xbf16>
    %c0_1 = arith.constant 0 : index
    %c0_2 = arith.constant 0 : index
    %1 = vector.load %arg1[%c0_1, %c0_2] : memref<22x128xbf16, #tpu.memory_space<vmem>>, vector<22x128xbf16>
    %cst = arith.constant dense<0.000000e+00> : vector<64x128xf32>
    %2 = tpu.matmul %0, %1, %cst {dimension_numbers = #tpu.dot_dimension_numbers<[1], [0], [0], [1], [0, 0, 1, 1], [], []>} : vector<64x22xbf16>, vector<22x128xbf16>, vector<64x128xf32> -> vector<64x128xf32>
    %c0_3 = arith.constant 0 : index
    %c0_4 = arith.constant 0 : index
    %3 = vector.load %arg3[%c0_3, %c0_4] : memref<64x1xf32, #tpu.memory_space<vmem>>, vector<64x1xf32>
    %4 = vector.broadcast %3 : vector<64x1xf32> to vector<64x128xf32>
    %5 = arith.addf %2, %4 : vector<64x128xf32>
    %6 = math.tanh %5 : vector<64x128xf32>
    %c0_5 = arith.constant 0 : index
    %c0_6 = arith.constant 0 : index
    %7 = vector.load %arg4[%c0_5, %c0_6] : memref<64x64xbf16, #tpu.memory_space<vmem>>, vector<64x64xbf16>
    %8 = arith.truncf %6 : vector<64x128xf32> to vector<64x128xbf16>
    %cst_7 = arith.constant dense<0.000000e+00> : vector<64x128xf32>
    %9 = tpu.matmul %7, %8, %cst_7 {dimension_numbers = #tpu.dot_dimension_numbers<[1], [0], [0], [1], [0, 0, 1, 1], [], []>} : vector<64x64xbf16>, vector<64x128xbf16>, vector<64x128xf32> -> vector<64x128xf32>
    %c0_8 = arith.constant 0 : index
    %c0_9 = arith.constant 0 : index
    %10 = vector.load %arg5[%c0_8, %c0_9] : memref<64x1xf32, #tpu.memory_space<vmem>>, vector<64x1xf32>
    %11 = vector.broadcast %10 : vector<64x1xf32> to vector<64x128xf32>
    %12 = arith.addf %9, %11 : vector<64x128xf32>
    %13 = math.tanh %12 : vector<64x128xf32>
    %c0_10 = arith.constant 0 : index
    %c0_11 = arith.constant 0 : index
    %14 = vector.load %arg6[%c0_10, %c0_11] : memref<64x64xbf16, #tpu.memory_space<vmem>>, vector<64x64xbf16>
    %15 = arith.truncf %13 : vector<64x128xf32> to vector<64x128xbf16>
    %cst_12 = arith.constant dense<0.000000e+00> : vector<64x128xf32>
    %16 = tpu.matmul %14, %15, %cst_12 {dimension_numbers = #tpu.dot_dimension_numbers<[1], [0], [0], [1], [0, 0, 1, 1], [], []>} : vector<64x64xbf16>, vector<64x128xbf16>, vector<64x128xf32> -> vector<64x128xf32>
    %c0_13 = arith.constant 0 : index
    %c0_14 = arith.constant 0 : index
    %17 = vector.load %arg7[%c0_13, %c0_14] : memref<64x1xf32, #tpu.memory_space<vmem>>, vector<64x1xf32>
    %18 = vector.broadcast %17 : vector<64x1xf32> to vector<64x128xf32>
    %19 = arith.addf %16, %18 : vector<64x128xf32>
    %20 = math.tanh %19 : vector<64x128xf32>
    %c0_15 = arith.constant 0 : index
    %c0_16 = arith.constant 0 : index
    %21 = vector.load %arg8[%c0_15, %c0_16] : memref<64x1xf32, #tpu.memory_space<vmem>>, vector<64x1xf32>
    %22 = vector.broadcast %21 : vector<64x1xf32> to vector<64x128xf32>
    %23 = arith.mulf %22, %20 : vector<64x128xf32>
    %cst_17 = arith.constant dense<0.000000e+00> : vector<128xf32>
    %24 = vector.multi_reduction <add>, %23, %cst_17 [0] : vector<64x128xf32> to vector<128xf32>
    %25 = vector.shape_cast %24 : vector<128xf32> to vector<1x128xf32>
    %c0_18 = arith.constant 0 : index
    %c0_19 = arith.constant 0 : index
    %26 = vector.load %arg9[%c0_18, %c0_19] : memref<1x1xf32, #tpu.memory_space<vmem>>, vector<1x1xf32>
    %27 = vector.broadcast %26 : vector<1x1xf32> to vector<1x128xf32>
    %28 = arith.addf %25, %27 : vector<1x128xf32>
    %c0_20 = arith.constant 0 : index
    %c0_21 = arith.constant 0 : index
    %29 = vector.load %arg10[%c0_20, %c0_21] : memref<1x128xf32, #tpu.memory_space<vmem>>, vector<1x128xf32>
    tpu.vector_store %arg10[%c0_20, %c0_21], %28 {strides = array<i32>} : memref<1x128xf32, #tpu.memory_space<vmem>>, vector<1x128xf32>,
    return
  }
  func.func @transform_0(%arg0: i32) -> (i32, i32) {
    %c0_i32 = arith.constant 0 : i32
    %c0_i32_0 = arith.constant 0 : i32
    return %c0_i32, %arg0 : i32, i32
  }
  func.func @transform_1(%arg0: i32) -> (i32, i32) {
    %c0_i32 = arith.constant 0 : i32
    %c0_i32_0 = arith.constant 0 : i32
    %c0_i32_1 = arith.constant 0 : i32
    return %c0_i32, %c0_i32_0 : i32, i32
  }
  func.func @transform_2(%arg0: i32) -> (i32, i32) {
    %c0_i32 = arith.constant 0 : i32
    %c0_i32_0 = arith.constant 0 : i32
    %c0_i32_1 = arith.constant 0 : i32
    return %c0_i32, %c0_i32_0 : i32, i32
  }
  func.func @transform_3(%arg0: i32) -> (i32, i32) {
    %c0_i32 = arith.constant 0 : i32
    %c0_i32_0 = arith.constant 0 : i32
    %c0_i32_1 = arith.constant 0 : i32
    return %c0_i32, %c0_i32_0 : i32, i32
  }
  func.func @transform_4(%arg0: i32) -> (i32, i32) {
    %c0_i32 = arith.constant 0 : i32
    %c0_i32_0 = arith.constant 0 : i32
    %c0_i32_1 = arith.constant 0 : i32
    return %c0_i32, %c0_i32_0 : i32, i32
  }
  func.func @transform_5(%arg0: i32) -> (i32, i32) {
    %c0_i32 = arith.constant 0 : i32
    %c0_i32_0 = arith.constant 0 : i32
    %c0_i32_1 = arith.constant 0 : i32
    return %c0_i32, %c0_i32_0 : i32, i32
  }
  func.func @transform_6(%arg0: i32) -> (i32, i32) {
    %c0_i32 = arith.constant 0 : i32
    %c0_i32_0 = arith.constant 0 : i32
    %c0_i32_1 = arith.constant 0 : i32
    return %c0_i32, %c0_i32_0 : i32, i32
  }
  func.func @transform_7(%arg0: i32) -> (i32, i32) {
    %c0_i32 = arith.constant 0 : i32
    %c0_i32_0 = arith.constant 0 : i32
    %c0_i32_1 = arith.constant 0 : i32
    return %c0_i32, %c0_i32_0 : i32, i32
  }
  func.func @transform_8(%arg0: i32) -> (i32, i32) {
    %c0_i32 = arith.constant 0 : i32
    %c0_i32_0 = arith.constant 0 : i32
    %c0_i32_1 = arith.constant 0 : i32
    return %c0_i32, %c0_i32_0 : i32, i32
  }
  func.func @transform_9(%arg0: i32) -> (i32, i32) {
    %c0_i32 = arith.constant 0 : i32
    %c0_i32_0 = arith.constant 0 : i32
    return %c0_i32, %arg0 : i32, i32
  }
}

</mosaic_0001>

<bundles_post_ra>
// kernel: batched_forward.1
= control target key start
LH: loop header
LB: loop body
LE: loop exit
PB: predicated region body
PF: predicated region fallthrough
CT: control target
= control target key end

     0   :  { %s1040_s0 = inlined_call_operand.vmem [shape: bf16[22,128], index: 0, kind: input, shape index: {}]   ;;  %s1041_s1 = inlined_call_operand.vmem [shape: bf16[64,22], index: 1, kind: input, shape index: {}]   ;;  %s1042_s2 = inlined_call_operand.vmem [shape: f32[64,1], index: 2, kind: input, shape index: {}]   ;;  %s1043_s3 = inlined_call_operand.vmem [shape: bf16[64,64], index: 3, kind: input, shape index: {}]   ;;  %s1044_s4 = inlined_call_operand.vmem [shape: f32[64,1], index: 4, kind: input, shape index: {}]   ;;  %s1045_s5 = inlined_call_operand.vmem [shape: bf16[64,64], index: 5, kind: input, shape index: {}]   ;;  %s1046_s6 = inlined_call_operand.vmem [shape: f32[64,1], index: 6, kind: input, shape index: {}]   ;;  %s1047_s7 = inlined_call_operand.vmem [shape: f32[64,1], index: 7, kind: input, shape index: {}]   ;;  %s1048_s8 = inlined_call_operand.<no memory space> [shape: f32[1,1], index: 8, kind: input, shape index: {}]   ;;  %s1049_s9 = inlined_call_operand.hbm [shape: f32[1,128], index: 9, kind: output, shape index: {}]  }
   0x1   :  { %v14_v0 = vstv %s1048_s8 }
   0x2   :  { %15 = vst [vmem:[#allocation2] sm:$0x1] %v14_v0 }
   0x3   :  { %v737_v1 = vld [vmem:[%s1040_s0] sm:$0xff]   ;;  %vm137_vm0 = vcmask 1042432   ;;  %v738_v2 = vld [vmem:[%s1040_s0 + $0x8] ss:$0 sps:$4 sm:$0x77]   ;;  %vm124_vm1 = vcmask 179200  }
   0x4   :  { %v739_v3 = vld [vmem:[%s1041_s1] sm:$0xff]   ;;  %688 = vmatprep.subr.bf16.mxu0 %v737_v1  ;;  %v139_v4 = vsel %vm137_vm0, %v738_v2, 0  ;;  %v740_v6 = vld [vmem:[%s1041_s1 + $0x8] sm:$0xff]   ;;  %v823_v7 = vmov 0   ;;  %v49_v8 = vld [vmem:[%s1042_s2 + $0x10] sm:$0xff] }
   0x5   :  { %689 = vmatpush3.bf16.msra.mxu0 %v737_v1  ;;  %692 = vmatprep.mubr.msk.bf16.mxu0 %vm124_vm1, %v739_v3  ;;  %v47_v5 = vld [vmem:[%s1042_s2] sm:$0xff]  ;;  %v741_v9 = vld [vmem:[%s1041_s1 + $0x10] sm:$0xff]   ;;  %v48_v10 = vld [vmem:[%s1042_s2 + $0x8] sm:$0xff] }
   0x6   :  { %732 = vmatprep.subr.msk.bf16.mxu0 %vm137_vm0, %v738_v2  ;;  %735 = vset.pattern.permute.xlu0 %v823_v7  ;;  %v50_v11 = vld [vmem:[%s1042_s2 + $0x18] sm:$0xff]  ;;  %v51_v12 = vld [vmem:[%s1042_s2 + $0x20] sm:$0xff]  ;;  %v52_v13 = vld [vmem:[%s1042_s2 + $0x28] sm:$0xff] }
   0x7   :  { %736 = vset.pattern.permute.xlu1 %v823_v7  ;;  %57 = vperm.xlu0 %735, %v47_v5   ;;  %v742_v14 = vld [vmem:[%s1041_s1 + $0x18] sm:$0xff]   ;;  %v53_v15 = vld [vmem:[%s1042_s2 + $0x30] sm:$0xff]  ;;  %v226_v17 = vld [vmem:[%s1044_s4] sm:$0xff] }
   0x8   :  { %67 = vperm.xlu1 %736, %v49_v8   ;;  %v54_v16 = vld [vmem:[%s1042_s2 + $0x38] sm:$0xff]  ;;  %v227_v18 = vld [vmem:[%s1044_s4 + $0x8] sm:$0xff] }
   0x9   :  { %691 = vmatpush3.bf16.msra.mxu0 %v139_v4 }
   0xb   :  { %62 = vperm.xlu0 %735, %v48_v10  }
   0xc   :  { %693 = vmatmul.mubr.msk.bf16.vlgmr.msra.gmra.mrb[0].mxu0 %vm124_vm1, %v740_v6  ;;  %72 = vperm.xlu1 %736, %v50_v11  }
   0xd   :  { %696 = vmatprep.mubr.msk.bf16.mxu0 %vm124_vm1, %v741_v9 }
   0xf   :  { %77 = vperm.xlu0 %735, %v51_v12  }
  0x10   :  { %82 = vperm.xlu1 %736, %v52_v13  }
  0x13   :  { %87 = vperm.xlu0 %735, %v53_v15  }
  0x14   :  { %697 = vmatmul.mubr.msk.bf16.gmra.mrb[4].mxu0 %vm124_vm1, %v742_v14  ;;  %92 = vperm.xlu1 %736, %v54_v16  }
  0x15   :  { %16 = vsyncpa [#allocation4], 0  ;;  %v228_v19 = vld [vmem:[%s1044_s4 + $0x10] sm:$0xff]  ;;  %v229_v20 = vld [vmem:[%s1044_s4 + $0x18] sm:$0xff]  ;;  %vm294_vm2 = vcmask 523264  }
  0x16   :  { %v230_v21 = vld [vmem:[%s1044_s4 + $0x20] sm:$0xff]  ;;  %v231_v22 = vld [vmem:[%s1044_s4 + $0x28] sm:$0xff]  ;;  %v232_v23 = vld [vmem:[%s1044_s4 + $0x30] sm:$0xff] }
  0x17   :  { %236 = vperm.xlu0 %735, %v226_v17   ;;  %v233_v24 = vld [vmem:[%s1044_s4 + $0x38] sm:$0xff]  ;;  %v392_v25 = vld [vmem:[%s1046_s6] sm:$0xff]  ;;  %v393_v26 = vld [vmem:[%s1046_s6 + $0x8] sm:$0xff] }
  0x18   :  { %241 = vperm.xlu1 %736, %v227_v18   ;;  %v394_v27 = vld [vmem:[%s1046_s6 + $0x10] sm:$0xff]  ;;  %v395_v28 = vld [vmem:[%s1046_s6 + $0x18] sm:$0xff]  ;;  %v396_v29 = vld [vmem:[%s1046_s6 + $0x20] sm:$0xff] }
  0x19   :  { %v397_v30 = vld [vmem:[%s1046_s6 + $0x28] sm:$0xff]  ;;  %v398_v31 = vld [vmem:[%s1046_s6 + $0x30] sm:$0xff]  ;;  %v399_v32 = vld [vmem:[%s1046_s6 + $0x38] sm:$0xff] }
  0x1a   :  { %v545_v33 = vld [vmem:[%s1047_s7] sm:$0xff]  ;;  %v546_v34 = vld [vmem:[%s1047_s7 + $0x8] sm:$0xff]  ;;  %v547_v35 = vld [vmem:[%s1047_s7 + $0x10] sm:$0xff] }
  0x1b   :  { %246 = vperm.xlu0 %735, %v228_v19   ;;  %v548_v36 = vld [vmem:[%s1047_s7 + $0x18] sm:$0xff]  ;;  %v549_v37 = vld [vmem:[%s1047_s7 + $0x20] sm:$0xff]  ;;  %v550_v38 = vld [vmem:[%s1047_s7 + $0x28] sm:$0xff] }
  0x1c   :  { %251 = vperm.xlu1 %736, %v229_v20   ;;  %v551_v39 = vld [vmem:[%s1047_s7 + $0x30] sm:$0xff]  ;;  %v552_v40 = vld [vmem:[%s1047_s7 + $0x38] sm:$0xff]  ;;  %v614_v41 = vld [vmem:[#allocation2] sm:$0x1] }
  0x1d   :  { %v743_v42 = vld [vmem:[%s1043_s3] sm:$0xff]   ;;  %v744_v15 = vld [vmem:[%s1043_s3 + $0x8] sm:$0xff]   ;;  %v745_v16 = vld [vmem:[%s1043_s3 + $0x10] sm:$0xff]  }
  0x1e   :  { %708 = vmatprep.mubr.msk.bf16.mxu1 %vm294_vm2, %v743_v42  ;;  %v746_v17 = vld [vmem:[%s1043_s3 + $0x18] sm:$0xff]   ;;  %v747_v18 = vld [vmem:[%s1045_s5] sm:$0xff]  }
  0x1f   :  { %256 = vperm.xlu0 %735, %v230_v21   ;;  %724 = vmatprep.mubr.msk.bf16.mxu0 %vm294_vm2, %v747_v18 }
  0x20   :  { %261 = vperm.xlu1 %736, %v231_v22  }
  0x23   :  { %266 = vperm.xlu0 %735, %v232_v23  }
  0x24   :  { %271 = vperm.xlu1 %736, %v233_v24  }
  0x27   :  { %402 = vperm.xlu0 %735, %v392_v25  }
  0x28   :  { %407 = vperm.xlu1 %736, %v393_v26  }
  0x2b   :  { %412 = vperm.xlu0 %735, %v394_v27  }
  0x2c   :  { %417 = vperm.xlu1 %736, %v395_v28  }
  0x2f   :  { %422 = vperm.xlu0 %735, %v396_v29  }
  0x30   :  { %427 = vperm.xlu1 %736, %v397_v30  }
  0x33   :  { %432 = vperm.xlu0 %735, %v398_v31  }
  0x34   :  { %437 = vperm.xlu1 %736, %v399_v32  }
  0x37   :  { %555 = vperm.xlu0 %735, %v545_v33  }
  0x38   :  { %560 = vperm.xlu1 %736, %v546_v34  }
  0x3b   :  { %565 = vperm.xlu0 %735, %v547_v35  }
  0x3c   :  { %570 = vperm.xlu1 %736, %v548_v36  }
  0x3f   :  { %575 = vperm.xlu0 %735, %v549_v37  }
  0x40   :  { %580 = vperm.xlu1 %736, %v550_v38  }
  0x43   :  { %585 = vperm.xlu0 %735, %v551_v39  }
  0x44   :  { %590 = vperm.xlu1 %736, %v552_v40  }
  0x47   :  { %617 = vperm.xlu0 %735, %v614_v41  }
  0x86   :  { %v58_v43 = vpop.permute.xlu0 %57 }
  0x87   :  { %v68_v44 = vpop.permute.xlu1 %67 }
  0x8a   :  { %v63_v45 = vpop.permute.xlu0 %62 }
  0x8b   :  { %v73_v46 = vpop.permute.xlu1 %72 }
  0x8e   :  { %v78_v50 = vpop.permute.xlu0 %77 }
  0x8f   :  { %v83_v55 = vpop.permute.xlu1 %82 }
  0x92   :  { %v88_v57 = vpop.permute.xlu0 %87 }
  0x93   :  { %v93_v61 = vpop.permute.xlu1 %92 }
  0x96   :  { %v237_v19 = vpop.permute.xlu0 %236 }
  0x97   :  { %v242_v20 = vpop.permute.xlu1 %241 }
  0x9a   :  { %v247_v21 = vpop.permute.xlu0 %246 }
  0x9b   :  { %v252_v22 = vpop.permute.xlu1 %251 }
  0x9e   :  { %v257_v26 = vpop.permute.xlu0 %256 }
  0x9f   :  { %v262_v31 = vpop.permute.xlu1 %261 }
  0xa2   :  { %v267_v33 = vpop.permute.xlu0 %266 }
  0xa3   :  { %v272_v37 = vpop.permute.xlu1 %271 }
  0xdf   :  { %v694_v47 = vpop.f32.mrb[0].mxu0 }
  0xe0   :  { %v184_v48 = vadd.f32 %v694_v47, %v68_v44  ;;  %v175_v49 = vpop.f32.mrb[1].mxu0 }
  0xe1   :  { %v176_v51 = vadd.f32 %v175_v49, %v58_v43  ;;  %v695_v52 = vpop.f32.mrb[2].mxu0 }
  0xe2   :  { %751 = vtanh.f32 %v184_v48  ;;  %v187_v53 = vadd.f32 %v695_v52, %v73_v46  ;;  %v178_v54 = vpop.f32.mrb[3].mxu0 }
  0xe3   :  { %753 = vtanh.f32 %v176_v51  ;;  %v179_v56 = vadd.f32 %v178_v54, %v63_v45 }
  0xe4   :  { %755 = vtanh.f32 %v187_v53 }
  0xe5   :  { %757 = vtanh.f32 %v179_v56  ;;  %v749_v56 = vld [vmem:[%s1045_s5 + $0x10] sm:$0xff]  }
  0xe7   :  { %v698_v58 = vpop.f32.mrb[4].mxu0 }
  0xe8   :  { %v200_v59 = vadd.f32 %v698_v58, %v88_v57  ;;  %v191_v60 = vpop.f32.mrb[5].mxu0  ;;  %v750_v57 = vld [vmem:[%s1045_s5 + $0x18] sm:$0xff]   ;;  %v403_v58 = vpop.permute.xlu0 %402 }
  0xe9   :  { %v192_v62 = vadd.f32 %v191_v60, %v78_v50  ;;  %v699_v63 = vpop.f32.mrb[6].mxu0 }
  0xea   :  { %759 = vtanh.f32 %v200_v59  ;;  %v203_v0 = vadd.f32 %v699_v63, %v93_v61  ;;  %v194_v1 = vpop.f32.mrb[7].mxu0  ;;  %v408_v59 = vpop.permute.xlu1 %407 }
  0xeb   :  { %761 = vtanh.f32 %v192_v62  ;;  %v195_v2 = vadd.f32 %v194_v1, %v83_v55  ;;  %v748_v55 = vld [vmem:[%s1045_s5 + $0x8] sm:$0xff]   ;;  %s824_s5 = smov [#allocation3]  }
  0xec   :  { %v752_v3 = vpop.eup %751  ;;  %763 = vtanh.f32 %v203_v0  ;;  %v413_v60 = vpop.permute.xlu0 %412  ;;  %s632_s21 = sshll.u32 %s824_s5, 4  ;;  %s633_s21 = int_to_ptr.vmem [resolvable:$true] %s632_s21 }
  0xed   :  { %v754_v4 = vpop.eup %753  ;;  %765 = vtanh.f32 %v195_v2  ;;  %s799_s22 = scalar_lea.vmem %s633_s21, 16  ;;  %s803_s23 = scalar_lea.vmem %s633_s21, 32 }
  0xee   :  { %v756_v5 = vpop.eup %755  ;;  %v418_v61 = vpop.permute.xlu1 %417  ;;  %p800_p0 = scmp.ne.s32.totalorder %s633_s21, %s799_s22  ;;  %p804_p1 = scmp.lt.s32.totalorder %s633_s21, %s633_s21 }
  0xef   :  { %v758_v6 = vpop.eup %757  ;;  %v223_v7 = vpack.c.bf16 %v756_v5, %v752_v3  ;;  %p805_p2 = scmp.lt.s32.totalorder %s803_s23, %s799_s22 }
  0xf0   :  { %v222_v8 = vpack.c.bf16 %v758_v6, %v754_v4  ;;  %v423_v62 = vpop.permute.xlu0 %422 }
  0xf1   :  { %p806_p3 = por %p805_p2, %p804_p1 }
  0xf2   :  { %700 = vmatprep.subr.bf16.mxu1 %v222_v8  ;;  %v428_v63 = vpop.permute.xlu1 %427 }
  0xf3   :  { %701 = vmatpush3.bf16.msra.mxu1 %v222_v8  ;;  %p807_p4 = pnand %p806_p3, %p800_p0 }
  0xf4   :  { %v760_v9 = vpop.eup %759  ;;  %702 = vmatprep.subr.bf16.mxu1 %v223_v7  ;;  %v433_v3 = vpop.permute.xlu0 %432 }
  0xf5   :  { %v762_v10 = vpop.eup %761 }
  0xf6   :  { %v764_v11 = vpop.eup %763 }
  0xf7   :  { %v766_v12 = vpop.eup %765  ;;  %703 = vmatpush3.bf16.msra.mxu1 %v223_v7  ;;  %v225_v13 = vpack.c.bf16 %v764_v11, %v760_v9  ;;  %v438_v7 = vpop.permute.xlu1 %437 }
  0xf8   :  { %v224_v14 = vpack.c.bf16 %v766_v12, %v762_v10  ;;  %v556_v10 = vpop.permute.xlu0 %555 }
  0xfa   :  { %704 = vmatprep.subr.bf16.mxu1 %v224_v14 }
  0xfb   :  { %705 = vmatpush3.bf16.msra.mxu1 %v224_v14  ;;  %v561_v14 = vpop.permute.xlu1 %560 }
  0xfc   :  { %706 = vmatprep.subr.bf16.mxu1 %v225_v13 }
  0xff   :  { %707 = vmatpush3.bf16.msra.mxu1 %v225_v13 }
 0x102   :  { %709 = vmatmul.mubr.msk.bf16.vlgmr.msra.gmra.mrb[0].mxu1 %vm294_vm2, %v744_v15 }
 0x103   :  { %712 = vmatprep.mubr.msk.bf16.mxu1 %vm294_vm2, %v745_v16 }
 0x10a   :  { %713 = vmatmul.mubr.msk.bf16.gmra.mrb[4].mxu1 %vm294_vm2, %v746_v17 }
 0x1d5   :  { %v710_v23 = vpop.f32.mrb[0].mxu1 }
 0x1d6   :  { %v350_v24 = vadd.f32 %v710_v23, %v247_v21  ;;  %v341_v25 = vpop.f32.mrb[1].mxu1  ;;  %v566_v21 = vpop.permute.xlu0 %565 }
 0x1d7   :  { %v342_v27 = vadd.f32 %v341_v25, %v237_v19  ;;  %v711_v28 = vpop.f32.mrb[2].mxu1 }
 0x1d8   :  { %767 = vtanh.f32 %v350_v24  ;;  %v353_v29 = vadd.f32 %v711_v28, %v252_v22  ;;  %v344_v30 = vpop.f32.mrb[3].mxu1  ;;  %v571_v24 = vpop.permute.xlu1 %570 }
 0x1d9   :  { %769 = vtanh.f32 %v342_v27  ;;  %v345_v32 = vadd.f32 %v344_v30, %v242_v20 }
 0x1da   :  { %771 = vtanh.f32 %v353_v29  ;;  %v576_v30 = vpop.permute.xlu0 %575 }
 0x1db   :  { %773 = vtanh.f32 %v345_v32 }
 0x1dd   :  { %v714_v34 = vpop.f32.mrb[4].mxu1 }
 0x1de   :  { %v366_v35 = vadd.f32 %v714_v34, %v267_v33  ;;  %v357_v36 = vpop.f32.mrb[5].mxu1  ;;  %v581_v34 = vpop.permute.xlu1 %580 }
 0x1df   :  { %v358_v38 = vadd.f32 %v357_v36, %v257_v26  ;;  %v715_v39 = vpop.f32.mrb[6].mxu1 }
 0x1e0   :  { %775 = vtanh.f32 %v366_v35  ;;  %v369_v40 = vadd.f32 %v715_v39, %v272_v37  ;;  %v360_v41 = vpop.f32.mrb[7].mxu1 }
 0x1e1   :  { %777 = vtanh.f32 %v358_v38  ;;  %v361_v42 = vadd.f32 %v360_v41, %v262_v31 }
 0x1e2   :  { %v768_v43 = vpop.eup %767  ;;  %779 = vtanh.f32 %v369_v40 }
 0x1e3   :  { %v770_v44 = vpop.eup %769  ;;  %781 = vtanh.f32 %v361_v42  ;;  %v586_v42 = vpop.permute.xlu0 %585 }
 0x1e4   :  { %v772_v45 = vpop.eup %771 }
 0x1e5   :  { %v774_v46 = vpop.eup %773  ;;  %v389_v47 = vpack.c.bf16 %v772_v45, %v768_v43  ;;  %v591_v45 = vpop.permute.xlu1 %590 }
 0x1e6   :  { %v388_v48 = vpack.c.bf16 %v774_v46, %v770_v44 }
 0x1e8   :  { %716 = vmatprep.subr.bf16.mxu0 %v388_v48 }
 0x1e9   :  { %717 = vmatpush3.bf16.msra.mxu0 %v388_v48  ;;  %v620_v48 = vlaneseq }
 0x1ea   :  { %v776_v49 = vpop.eup %775  ;;  %718 = vmatprep.subr.bf16.mxu0 %v389_v47 }
 0x1eb   :  { %v778_v50 = vpop.eup %777 }
 0x1ec   :  { %v780_v51 = vpop.eup %779 }
 0x1ed   :  { %v782_v52 = vpop.eup %781  ;;  %719 = vmatpush3.bf16.msra.mxu0 %v389_v47  ;;  %v391_v53 = vpack.c.bf16 %v780_v51, %v776_v49  ;;  %v621_v51 = vshrl.u32 %v620_v48, 7 }
 0x1ee   :  { %v390_v54 = vpack.c.bf16 %v782_v52, %v778_v50 }
 0x1f0   :  { %720 = vmatprep.subr.bf16.mxu0 %v390_v54 }
 0x1f1   :  { %721 = vmatpush3.bf16.msra.mxu0 %v390_v54  ;;  %v622_v54 = vsub.s32 0, %v621_v51 }
 0x1f2   :  { %722 = vmatprep.subr.bf16.mxu0 %v391_v53 }
 0x1f5   :  { %723 = vmatpush3.bf16.msra.mxu0 %v391_v53 }
 0x1f8   :  { %725 = vmatmul.mubr.msk.bf16.vlgmr.msra.gmra.mrb[8].mxu0 %vm294_vm2, %v748_v55 }
 0x1f9   :  { %728 = vmatprep.mubr.msk.bf16.mxu0 %vm294_vm2, %v749_v56  ;;  %v618_v56 = vpop.permute.xlu0 %617 }
 0x200   :  { %729 = vmatmul.mubr.msk.bf16.gmra.mrb[12].mxu0 %vm294_vm2, %v750_v57 }
 0x2cb   :  { %v726_v0 = vpop.f32.mrb[8].mxu0 }
 0x2cc   :  { %v515_v1 = vadd.f32 %v726_v0, %v413_v60  ;;  %v506_v2 = vpop.f32.mrb[9].mxu0 }
 0x2cd   :  { %v507_v4 = vadd.f32 %v506_v2, %v403_v58  ;;  %v727_v5 = vpop.f32.mrb[10].mxu0  ;;  %v623_v58 = vrot.slane %v618_v56, %v622_v54 }
 0x2ce   :  { %v509_v6 = vpop.f32.mrb[11].mxu0  ;;  %v518_v8 = vadd.f32 %v727_v5, %v418_v61 }
 0x2cf   :  { %783 = vtanh.f32 %v507_v4  ;;  %v510_v9 = vadd.f32 %v509_v6, %v408_v59 }
 0x2d0   :  { %785 = vtanh.f32 %v515_v1 }
 0x2d1   :  { %787 = vtanh.f32 %v510_v9 }
 0x2d2   :  { %789 = vtanh.f32 %v518_v8 }
 0x2d3   :  { %v730_v11 = vpop.f32.mrb[12].mxu0 }
 0x2d4   :  { %v531_v12 = vadd.f32 %v730_v11, %v433_v3  ;;  %v522_v13 = vpop.f32.mrb[13].mxu0 }
 0x2d5   :  { %v523_v15 = vadd.f32 %v522_v13, %v423_v62  ;;  %v731_v16 = vpop.f32.mrb[14].mxu0 }
 0x2d6   :  { %v525_v17 = vpop.f32.mrb[15].mxu0  ;;  %v534_v18 = vadd.f32 %v731_v16, %v438_v7 }
 0x2d7   :  { %791 = vtanh.f32 %v523_v15  ;;  %v526_v19 = vadd.f32 %v525_v17, %v428_v63 }
 0x2d8   :  { %793 = vtanh.f32 %v531_v12 }
 0x2d9   :  { %v784_v20 = vpop.eup %783  ;;  %795 = vtanh.f32 %v526_v19 }
 0x2da   :  { %v786_v22 = vpop.eup %785  ;;  %797 = vtanh.f32 %v534_v18  ;;  %v593_v25 = vmul.f32 %v784_v20, %v556_v10 }
 0x2db   :  { %v788_v23 = vpop.eup %787  ;;  %v595_v28 = vmul.f32 %v786_v22, %v566_v21 }
 0x2dc   :  { %v594_v26 = vmul.f32 %v788_v23, %v561_v14  ;;  %v790_v27 = vpop.eup %789 }
 0x2dd   :  { %v596_v31 = vmul.f32 %v790_v27, %v571_v24 }
 0x2de   :  { %v601_v29 = vadd.f32 %v594_v26, %v593_v25 }
 0x2e0   :  { %v602_v32 = vadd.f32 %v601_v29, %v595_v28 }
 0x2e1   :  { %v792_v33 = vpop.eup %791 }
 0x2e2   :  { %v794_v35 = vpop.eup %793  ;;  %v597_v36 = vmul.f32 %v792_v33, %v576_v30  ;;  %v603_v37 = vadd.f32 %v602_v32, %v596_v31 }
 0x2e3   :  { %v796_v38 = vpop.eup %795  ;;  %v599_v43 = vmul.f32 %v794_v35, %v586_v42 }
 0x2e4   :  { %v604_v39 = vadd.f32 %v603_v37, %v597_v36  ;;  %v598_v40 = vmul.f32 %v796_v38, %v581_v34  ;;  %v798_v41 = vpop.eup %797 }
 0x2e5   :  { %v600_v46 = vmul.f32 %v798_v41, %v591_v45 }
 0x2e6   :  { %v605_v44 = vadd.f32 %v604_v39, %v598_v40 }
 0x2e8   :  { %v606_v47 = vadd.f32 %v605_v44, %v599_v43 }
 0x2ea   :  { %v607_v49 = vadd.f32 %v606_v47, %v600_v46 }
 0x2ec   :  { %v608_v50 = vrot.slane %v607_v49, 4 }
 0x2ee   :  { %v609_v52 = vadd.f32 %v608_v50, %v607_v49 }
 0x2f0   :  { %v610_v53 = vrot.slane %v609_v52, 2 }
 0x2f2   :  { %v611_v55 = vadd.f32 %v610_v53, %v609_v52 }
 0x2f4   :  { %v612_v57 = vrot.slane %v611_v55, 1 }
 0x2f6   :  { %v613_v59 = vadd.f32 %v612_v57, %v611_v55 }
 0x2f8   :  { %v624_v60 = vadd.f32 %v623_v58, %v613_v59 }
 0x2fa   :  { %625 = vst [vmem:[#allocation3] sm:$0x1] %v624_v60 }
 0x2fb   :  { %810 = shalt.err (!%p807_p4)
}
 0x2fc   :  { %s811_s6 = scalar_lea.hbm %s1049_s9, 16 }
 0x2fd   :  { %p812_p5 = scmp.ne.s32.totalorder %s1049_s9, %s811_s6  ;;  %p815_p6 = scmp.lt.u32.totalorder %s811_s6, %s1049_s9 }
 0x2ff   :  { %p817_p7 = pnand %p815_p6, %p812_p5 }
 0x301   :  { %820 = shalt.err (!%p817_p7)
}
 0x302   :  { %635 = dma.vmem_to_hbm [thread:$0]  %s633_s21, 16, %s1049_s9, [#allocation4]  }
 0x303   :  { %821 = dma.done.wait [#allocation4], 16  }
 0x304   :  { %822 = vsyncadd [#allocation4], 4294967280 }
 0x305   :  { %639 = vsyncpa [#allocation4], 1 }

</bundles_post_ra>
